<compile_context>
chip_gen: v5e
topology: v5e:2x2
jax: 0.10.0
libtpu: 0.0.40
codegen_flags: <defaults>
</compile_context>

<pallas_src>
import functools

import jax
import jax.numpy as jnp
from jax.experimental import pallas as pl
from jax.experimental.pallas import tpu as pltpu

LANES = 128            # vreg lane width
ACC_SUBLANES = 8       # vreg sublane depth -> (8, 128) accumulator
MAX_TILE_ROWS = 2048   # 1 MiB f32 per input block; safe on v5e/v6e/v7x defaults
MIN_KERNEL_ELEMENTS = 8192  # below this, plain JAX beats any kernel launch


def _l1_sum_kernel(t_ref, s_ref, o_ref, acc_ref, *,
                   rows_valid, tile_rows, needs_mask, scale_over_n):
    i = pl.program_id(0)

    @pl.when(i == 0)
    def _():
        acc_ref[...] = jnp.zeros_like(acc_ref)
        o_ref[...] = jnp.zeros_like(o_ref)

    diff = s_ref[...].astype(jnp.float32) - t_ref[...].astype(jnp.float32)
    abs_diff = jnp.abs(diff)

    if needs_mask:
        # Mask rows that fall past the true (lane-padded) row count; only the
        # last partial grid block has any invalid rows.
        row_in_tile = jax.lax.broadcasted_iota(jnp.int32, (tile_rows, LANES), 0)
        global_row = i * tile_rows + row_in_tile
        abs_diff = jnp.where(global_row < rows_valid, abs_diff, 0.0)

    # Fold the (tile_rows, 128) tile into the (8, 128) vreg accumulator:
    # the reshape matches vreg boundaries exactly, so this is pure VPU adds.
    acc_ref[...] += jnp.sum(
        abs_diff.reshape(tile_rows // ACC_SUBLANES, ACC_SUBLANES, LANES), axis=0
    )

    @pl.when(i == pl.num_programs(0) - 1)
    def _():
        # Single cross-lane/sublane reduction + mean/scaling, once per call.
        total = jnp.sum(acc_ref[...])
        o_ref[...] = (total * scale_over_n).reshape(1, 1)


def fov_supervision_loss(teacher_focal, student_focal, fov_l1_scaling=1.0):
    """Equivalent of FoVSupervision.forward(teacher_focal, student_focal)."""
    assert teacher_focal.shape == student_focal.shape
    n = int(teacher_focal.size)
    if n == 0:
        raise ValueError("FoVSupervision: empty focal tensor (n == 0)")

    scale_over_n = float(fov_l1_scaling) / float(n)

    # Tiny-input fast path: the real FoV use case is [B, 2]; XLA's fused
    # reduction beats a kernel launch at these sizes on every generation.
    if n < MIN_KERNEL_ELEMENTS:
        diff = student_focal.astype(jnp.float32) - teacher_focal.astype(jnp.float32)
        return jnp.sum(jnp.abs(diff)) * scale_over_n

    # Flatten; keep native dtype (bf16 stays bf16 in HBM, cast happens in-VMEM).
    t = teacher_focal.reshape(-1)
    s = student_focal.reshape(-1)

    # Pad only to a multiple of 128 lanes when needed (zero-padding both sides
    # contributes |0 - 0| = 0). The reshape to (rows, 128) is a layout no-op.
    pad = (-n) % LANES
    if pad:
        t = jnp.pad(t, (0, pad))
        s = jnp.pad(s, (0, pad))
    rows = (n + pad) // LANES
    t2 = t.reshape(rows, LANES)
    s2 = s.reshape(rows, LANES)

    # Largest sublane-aligned row tile that fits the array (block never exceeds
    # the array extent; n >= MIN_KERNEL_ELEMENTS guarantees rows >= 8).
    tile_rows = max(ACC_SUBLANES,
                    min(MAX_TILE_ROWS, (rows // ACC_SUBLANES) * ACC_SUBLANES))
    grid_steps = pl.cdiv(rows, tile_rows)
    needs_mask = (rows % tile_rows) != 0

    kernel = functools.partial(
        _l1_sum_kernel,
        rows_valid=rows,
        tile_rows=tile_rows,
        needs_mask=needs_mask,
        scale_over_n=scale_over_n,
    )

    out = pl.pallas_call(
        kernel,
        out_shape=jax.ShapeDtypeStruct((1, 1), jnp.float32),
        grid_spec=pltpu.PrefetchScalarGridSpec(
            num_scalar_prefetch=0,
            grid=(grid_steps,),
            in_specs=[
                pl.BlockSpec((tile_rows, LANES), lambda i: (i, 0)),
                pl.BlockSpec((tile_rows, LANES), lambda i: (i, 0)),
            ],
            out_specs=pl.BlockSpec((1, 1), lambda i: (0, 0)),
            scratch_shapes=[pltpu.VMEM((ACC_SUBLANES, LANES), jnp.float32)],
        ),
        compiler_params=pltpu.CompilerParams(dimension_semantics=("arbitrary",)),
    )(t2, s2)

    return out[0, 0]


if __name__ == "__main__":
    config = {"fov_l1_scaling": 10.0}

    key = jax.random.PRNGKey(0)
    k1, k2, k3, k4, k5, k6 = jax.random.split(key, 6)

    # 1) The actual FoV use case: batch=2, (fx, fy) per image -> fast path.
    t_small = jax.random.uniform(k1, (2, 2), jnp.float32, 200.0, 800.0)
    s_small = jax.random.uniform(k2, (2, 2), jnp.float32, 200.0, 800.0)
    loss_small = jax.block_until_ready(
        fov_supervision_loss(t_small, s_small, config["fov_l1_scaling"]))
    ref_small = config["fov_l1_scaling"] * jnp.mean(jnp.abs(s_small - t_small))
    assert jnp.allclose(loss_small, ref_small, rtol=1e-5, atol=1e-5), (loss_small, ref_small)

    # 2) Kernel path: lane-aligned f32 (single full tile, no masking).
    t_big = jax.random.uniform(k3, (8, 2048), jnp.float32, 200.0, 800.0)
    s_big = jax.random.uniform(k4, (8, 2048), jnp.float32, 200.0, 800.0)
    loss_big = jax.block_until_ready(
        fov_supervision_loss(t_big, s_big, config["fov_l1_scaling"]))
    ref_big = config["fov_l1_scaling"] * jnp.mean(jnp.abs(s_big - t_big))
    assert jnp.allclose(loss_big, ref_big, rtol=1e-5, atol=1e-4), (loss_big, ref_big)

    # 3) Kernel path: ragged bf16 (exercises lane padding + in-kernel row mask).
    t_rag = jax.random.uniform(k5, (130, 101), jnp.float32, 200.0, 800.0).astype(jnp.bfloat16)
    s_rag = jax.random.uniform(k6, (130, 101), jnp.float32, 200.0, 800.0).astype(jnp.bfloat16)
    loss_rag = jax.block_until_ready(
        fov_supervision_loss(t_rag, s_rag, config["fov_l1_scaling"]))
    ref_rag = config["fov_l1_scaling"] * jnp.mean(
        jnp.abs(s_rag.astype(jnp.float32) - t_rag.astype(jnp.float32)))
    assert jnp.allclose(loss_rag, ref_rag, rtol=1e-5, atol=1e-4), (loss_rag, ref_rag)

    print("KERNEL_OK")
</pallas_src>

<mosaic_0001>
module attributes {stable_mosaic.version = 11 : i64} {
  func.func @_l1_sum_kernel(%arg0: i32, %arg1: memref<128x128xf32, #tpu.memory_space<vmem>>, %arg2: memref<128x128xf32, #tpu.memory_space<vmem>>, %arg3: memref<1x1xf32, #tpu.memory_space<vmem>>, %arg4: memref<8x128xf32, #tpu.memory_space<vmem>>) attributes {dimension_semantics = [#tpu.dimension_semantics<arbitrary>], iteration_bounds = array<i64: 1>, scalar_prefetch = 0 : i64, scratch_operands = 1 : i64, tpu.core_type = #tpu.core_type<tc>, window_params = [{transform_indices = @transform_0, window_bounds = array<i64: 128, 128>}, {transform_indices = @transform_1, window_bounds = array<i64: 128, 128>}, {pipeline_mode = #tpu.pipeline_mode<synchronous>, transform_indices = @transform_2, window_bounds = array<i64: 1, 1>}]} {
    %c0_i32 = arith.constant 0 : i32
    %0 = arith.cmpi eq, %arg0, %c0_i32 : i32
    %1 = arith.extui %0 : i1 to i32
    %c0_i32_0 = arith.constant 0 : i32
    %2 = arith.cmpi ne, %1, %c0_i32_0 : i32
    scf.if %2 {
      %cst_10 = arith.constant 0.000000e+00 : f32
      %15 = vector.broadcast %cst_10 : f32 to vector<8x128xf32>
      %c0_11 = arith.constant 0 : index
      %c0_12 = arith.constant 0 : index
      %16 = vector.load %arg4[%c0_11, %c0_12] : memref<8x128xf32, #tpu.memory_space<vmem>>, vector<8x128xf32>
      tpu.vector_store %arg4[%c0_11, %c0_12], %15 {strides = array<i32>} : memref<8x128xf32, #tpu.memory_space<vmem>>, vector<8x128xf32>,
      %cst_13 = arith.constant 0.000000e+00 : f32
      %17 = vector.broadcast %cst_13 : f32 to vector<1x1xf32>
      %c0_14 = arith.constant 0 : index
      %c0_15 = arith.constant 0 : index
      %18 = vector.load %arg3[%c0_14, %c0_15] : memref<1x1xf32, #tpu.memory_space<vmem>>, vector<1x1xf32>
      tpu.vector_store %arg3[%c0_14, %c0_15], %17 {strides = array<i32>} : memref<1x1xf32, #tpu.memory_space<vmem>>, vector<1x1xf32>,
    } else {
    }
    %c0 = arith.constant 0 : index
    %c0_1 = arith.constant 0 : index
    %3 = vector.load %arg2[%c0, %c0_1] : memref<128x128xf32, #tpu.memory_space<vmem>>, vector<128x128xf32>
    %c0_2 = arith.constant 0 : index
    %c0_3 = arith.constant 0 : index
    %4 = vector.load %arg1[%c0_2, %c0_3] : memref<128x128xf32, #tpu.memory_space<vmem>>, vector<128x128xf32>
    %5 = arith.subf %3, %4 : vector<128x128xf32>
    %6 = math.absf %5 : vector<128x128xf32>
    %c0_4 = arith.constant 0 : index
    %c0_5 = arith.constant 0 : index
    %7 = vector.load %arg4[%c0_4, %c0_5] : memref<8x128xf32, #tpu.memory_space<vmem>>, vector<8x128xf32>
    %8 = vector.shape_cast %6 : vector<128x128xf32> to vector<16x8x128xf32>
    %cst = arith.constant dense<0.000000e+00> : vector<8x128xf32>
    %9 = vector.multi_reduction <add>, %8, %cst [0] : vector<16x8x128xf32> to vector<8x128xf32>
    %10 = arith.addf %7, %9 : vector<8x128xf32>
    %c0_6 = arith.constant 0 : index
    %c0_7 = arith.constant 0 : index
    %11 = vector.load %arg4[%c0_6, %c0_7] : memref<8x128xf32, #tpu.memory_space<vmem>>, vector<8x128xf32>
    tpu.vector_store %arg4[%c0_6, %c0_7], %10 {strides = array<i32>} : memref<8x128xf32, #tpu.memory_space<vmem>>, vector<8x128xf32>,
    %c0_i32_8 = arith.constant 0 : i32
    %12 = arith.cmpi eq, %arg0, %c0_i32_8 : i32
    %13 = arith.extui %12 : i1 to i32
    %c0_i32_9 = arith.constant 0 : i32
    %14 = arith.cmpi ne, %13, %c0_i32_9 : i32
    scf.if %14 {
      %c0_10 = arith.constant 0 : index
      %c0_11 = arith.constant 0 : index
      %15 = vector.load %arg4[%c0_10, %c0_11] : memref<8x128xf32, #tpu.memory_space<vmem>>, vector<8x128xf32>
      %16 = vector.shape_cast %15 : vector<8x128xf32> to vector<1x8x128xf32>
      %cst_12 = arith.constant dense<0.000000e+00> : vector<1xf32>
      %17 = vector.multi_reduction <add>, %16, %cst_12 [1, 2] : vector<1x8x128xf32> to vector<1xf32>
      %18 = vector.shape_cast %17 : vector<1xf32> to vector<1x1x1xf32>
      %19 = vector.extract %18[0, 0, 0] : f32 from vector<1x1x1xf32>
      %cst_13 = arith.constant 6.10351563E-4 : f32
      %20 = arith.mulf %19, %cst_13 : f32
      %21 = vector.broadcast %20 : f32 to vector<1x1xf32>
      %c0_14 = arith.constant 0 : index
      %c0_15 = arith.constant 0 : index
      %22 = vector.load %arg3[%c0_14, %c0_15] : memref<1x1xf32, #tpu.memory_space<vmem>>, vector<1x1xf32>
      tpu.vector_store %arg3[%c0_14, %c0_15], %21 {strides = array<i32>} : memref<1x1xf32, #tpu.memory_space<vmem>>, vector<1x1xf32>,
    } else {
    }
    return
  }
  func.func @transform_0(%arg0: i32) -> (i32, i32) {
    %c0_i32 = arith.constant 0 : i32
    %c0_i32_0 = arith.constant 0 : i32
    return %arg0, %c0_i32 : i32, i32
  }
  func.func @transform_1(%arg0: i32) -> (i32, i32) {
    %c0_i32 = arith.constant 0 : i32
    %c0_i32_0 = arith.constant 0 : i32
    return %arg0, %c0_i32 : i32, i32
  }
  func.func @transform_2(%arg0: i32) -> (i32, i32) {
    %c0_i32 = arith.constant 0 : i32
    %c0_i32_0 = arith.constant 0 : i32
    %c0_i32_1 = arith.constant 0 : i32
    return %c0_i32, %c0_i32_0 : i32, i32
  }
}

</mosaic_0001>

<bundles_post_ra>
// kernel: tpu_custom_call.1
= control target key start
LH: loop header
LB: loop body
LE: loop exit
PB: predicated region body
PF: predicated region fallthrough
CT: control target
= control target key end

     0   :  { %7 = vsyncpa [#allocation4], 0  ;;  %s284_s0 = inlined_call_operand.hbm [shape: f32[128,128], index: 0, kind: input, shape index: {}]   ;;  %s285_s1 = inlined_call_operand.hbm [shape: f32[128,128], index: 1, kind: input, shape index: {}]   ;;  %s286_s2 = inlined_call_operand.hbm [shape: f32[1,1], index: 2, kind: output, shape index: {}]  }
   0x1   :  { %8 = vsyncpa [#allocation7], 0 }
   0x2   :  { %9 = vsyncpa [#allocation5], 0  ;;  %s14_s11 = sshll.u32 %s284_s0, 4  ;;  %s254_s12 = smov [#allocation3]   ;;  %s15_s11 = int_to_ptr.hbm [resolvable:$true] %s14_s11 }
   0x3   :  { %s16_s13 = sshll.u32 %s254_s12, 4  ;;  %s27_s16 = sshll.u32 %s285_s1, 4  ;;  %s17_s13 = int_to_ptr.vmem [resolvable:$true] %s16_s13  ;;  %s28_s16 = int_to_ptr.hbm [resolvable:$true] %s27_s16 }
   0x4   :  { %s255_s17 = smov 128   ;;  %s256_s18 = smov 8  }
   0x5   :  { %22 = dma.hbm_to_vmem [thread:$0]  %s15_s11, 2048, %s17_s13, [#allocation4], %s255_s17, %s255_s17, %s256_s18  }
   0x6   :  { %s257_s19 = smov [#allocation6]  }
   0x7   :  { %s29_s20 = sshll.u32 %s257_s19, 4  ;;  %s30_s20 = int_to_ptr.vmem [resolvable:$true] %s29_s20 }
   0x8   :  { %35 = dma.hbm_to_vmem [thread:$0]  %s28_s16, 2048, %s30_s20, [#allocation7], %s255_s17, %s255_s17, %s256_s18  }
   0x9   :  { %248 = dma.done.wait [#allocation4], 2048  }
   0xa   :  { %249 = vsyncadd [#allocation4], 4294965248 }
   0xb   :  { %250 = dma.done.wait [#allocation7], 2048  }
   0xc   :  { %251 = vsyncadd [#allocation7], 4294965248  ;;  %v51_v0 = vld [vmem:[#allocation6] sm:$0xff]  ;;  %v52_v1 = vld [vmem:[#allocation6 + $0x8] sm:$0xff]  ;;  %vm49_vm0 = vcmask 0   ;;  %s259_s0 = smov [#allocation8]  }
   0xd   :  { %v53_v2 = vld [vmem:[#allocation6 + $0x10] sm:$0xff]  ;;  %v54_v3 = vld [vmem:[#allocation6 + $0x18] sm:$0xff]  ;;  %v67_v4 = vld [vmem:[#allocation3] sm:$0xff]  ;;  %s155_s1 = sshll.u32 %s259_s0, 4  ;;  %s157_s23 = sshll.u32 %s286_s2, 4  ;;  %s156_s1 = int_to_ptr.vmem [resolvable:$true] %s155_s1  ;;  %s158_s23 = int_to_ptr.hbm [resolvable:$true] %s157_s23 }
   0xe   :  { %v68_v5 = vld [vmem:[#allocation3 + $0x8] sm:$0xff]  ;;  %v69_v6 = vld [vmem:[#allocation3 + $0x10] sm:$0xff]  ;;  %v70_v7 = vld [vmem:[#allocation3 + $0x18] sm:$0xff]  ;;  %v83_v8 = vsub.f32 %v51_v0, %v67_v4 }
   0xf   :  { %v84_v9 = vsub.f32 %v52_v1, %v68_v5  ;;  %v55_v10 = vld [vmem:[#allocation6 + $0x20] sm:$0xff]  ;;  %v85_v12 = vsub.f32 %v53_v2, %v69_v6  ;;  %v86_v13 = vsub.f32 %v54_v3, %v70_v7  ;;  %v56_v15 = vld [vmem:[#allocation6 + $0x28] sm:$0xff]  ;;  %v57_v20 = vld [vmem:[#allocation6 + $0x30] sm:$0xff] }
  0x10   :  { %v71_v11 = vld [vmem:[#allocation3 + $0x20] sm:$0xff]  ;;  %v99_v14 = vand.u32 2147483647, %v83_v8  ;;  %v72_v16 = vld [vmem:[#allocation3 + $0x28] sm:$0xff]  ;;  %v73_v21 = vld [vmem:[#allocation3 + $0x30] sm:$0xff] }
  0x11   :  { %v100_v17 = vand.u32 2147483647, %v84_v9  ;;  %v87_v18 = vsub.f32 %v55_v10, %v71_v11  ;;  %v101_v19 = vand.u32 2147483647, %v85_v12  ;;  %v88_v22 = vsub.f32 %v56_v15, %v72_v16  ;;  %v58_v25 = vld [vmem:[#allocation6 + $0x38] sm:$0xff]  ;;  %v59_v30 = vld [vmem:[#allocation6 + $0x40] sm:$0xff] }
  0x12   :  { %v102_v23 = vand.u32 2147483647, %v86_v13  ;;  %v74_v26 = vld [vmem:[#allocation3 + $0x38] sm:$0xff]  ;;  %v89_v27 = vsub.f32 %v57_v20, %v73_v21  ;;  %v75_v31 = vld [vmem:[#allocation3 + $0x40] sm:$0xff]  ;;  %v60_v35 = vld [vmem:[#allocation6 + $0x48] sm:$0xff] }
  0x13   :  { %v116_v24 = vadd.f32 %v100_v17, %v99_v14  ;;  %v103_v28 = vand.u32 2147483647, %v87_v18  ;;  %v90_v32 = vsub.f32 %v58_v25, %v74_v26  ;;  %v104_v33 = vand.u32 2147483647, %v88_v22  ;;  %v76_v36 = vld [vmem:[#allocation3 + $0x48] sm:$0xff]  ;;  %v61_v40 = vld [vmem:[#allocation6 + $0x50] sm:$0xff] }
  0x14   :  { %v91_v37 = vsub.f32 %v59_v30, %v75_v31  ;;  %v105_v38 = vand.u32 2147483647, %v89_v27  ;;  %v77_v41 = vld [vmem:[#allocation3 + $0x50] sm:$0xff]  ;;  %v92_v42 = vsub.f32 %v60_v35, %v76_v36  ;;  %v62_v45 = vld [vmem:[#allocation6 + $0x58] sm:$0xff]  ;;  %v63_v50 = vld [vmem:[#allocation6 + $0x60] sm:$0xff]  ;;  %v258_v22 = vmov 0.0  }
  0x15   :  { %v117_v29 = vadd.f32 %v116_v24, %v101_v19  ;;  %v106_v43 = vand.u32 2147483647, %v90_v32  ;;  %v78_v46 = vld [vmem:[#allocation3 + $0x58] sm:$0xff]  ;;  %v93_v47 = vsub.f32 %v61_v40, %v77_v41  ;;  %v79_v51 = vld [vmem:[#allocation3 + $0x60] sm:$0xff]  ;;  %v64_v55 = vld [vmem:[#allocation6 + $0x68] sm:$0xff] }
  0x16   :  { %v107_v48 = vand.u32 2147483647, %v91_v37  ;;  %v94_v52 = vsub.f32 %v62_v45, %v78_v46  ;;  %v108_v53 = vand.u32 2147483647, %v92_v42  ;;  %v80_v56 = vld [vmem:[#allocation3 + $0x68] sm:$0xff]  ;;  %v95_v57 = vsub.f32 %v63_v50, %v79_v51  ;;  %v65_v60 = vld [vmem:[#allocation6 + $0x70] sm:$0xff] }
  0x17   :  { %v118_v34 = vadd.f32 %v117_v29, %v102_v23  ;;  %v109_v58 = vand.u32 2147483647, %v93_v47  ;;  %v81_v61 = vld [vmem:[#allocation3 + $0x70] sm:$0xff]  ;;  %v96_v62 = vsub.f32 %v64_v55, %v80_v56  ;;  %v66_v1 = vld [vmem:[#allocation6 + $0x78] sm:$0xff]  ;;  %50 = vst.msk [vmem:[#allocation8] sm:$0x1] %vm49_vm0, %v258_v22 }
  0x18   :  { %v110_v63 = vand.u32 2147483647, %v94_v52  ;;  %v82_v2 = vld [vmem:[#allocation3 + $0x78] sm:$0xff]  ;;  %v97_v3 = vsub.f32 %v65_v60, %v81_v61  ;;  %v111_v4 = vand.u32 2147483647, %v95_v57 }
  0x19   :  { %v119_v39 = vadd.f32 %v118_v34, %v103_v28  ;;  %v98_v6 = vsub.f32 %v66_v1, %v82_v2  ;;  %v112_v7 = vand.u32 2147483647, %v96_v62 }
  0x1a   :  { %v113_v9 = vand.u32 2147483647, %v97_v3 }
  0x1b   :  { %v120_v44 = vadd.f32 %v119_v39, %v104_v33  ;;  %v114_v11 = vand.u32 2147483647, %v98_v6 }
  0x1d   :  { %v121_v49 = vadd.f32 %v120_v44, %v105_v38 }
  0x1f   :  { %v122_v54 = vadd.f32 %v121_v49, %v106_v43 }
  0x21   :  { %v123_v59 = vadd.f32 %v122_v54, %v107_v48 }
  0x23   :  { %v124_v0 = vadd.f32 %v123_v59, %v108_v53 }
  0x25   :  { %v125_v5 = vadd.f32 %v124_v0, %v109_v58 }
  0x27   :  { %v126_v8 = vadd.f32 %v125_v5, %v110_v63 }
  0x29   :  { %v127_v10 = vadd.f32 %v126_v8, %v111_v4 }
  0x2b   :  { %v128_v12 = vadd.f32 %v127_v10, %v112_v7 }
  0x2d   :  { %v129_v13 = vadd.f32 %v128_v12, %v113_v9 }
  0x2f   :  { %v130_v14 = vadd.f32 %v129_v13, %v114_v11 }
  0x31   :  { %137 = vadd.xlane.f32.xlu0 %v130_v14 }
  0xa4   :  { %v138_v15 = vpop.xlane.xlu0 %137 }
  0xa5   :  { %v139_v16 = vrot.slane %v138_v15, 4 }
  0xa7   :  { %v140_v17 = vadd.f32 %v139_v16, %v138_v15 }
  0xa9   :  { %v141_v18 = vrot.slane %v140_v17, 2 }
  0xab   :  { %v142_v19 = vadd.f32 %v141_v18, %v140_v17 }
  0xad   :  { %v143_v20 = vrot.slane %v142_v19, 1 }
  0xaf   :  { %v144_v21 = vadd.f32 %v143_v20, %v142_v19 }
  0xb1   :  { %168 = vpush %v144_v21 }
  0xe2   :  { %s169_s24 = spop %168 }
  0xe3   :  { %s146_s25 = smul.f32 0.00061035156, %s169_s24 }
  0xe5   :  { %v147_v23 = vstv %s146_s25 }
  0xe6   :  { %149 = vst.msk [vmem:[#allocation8] sm:$0x1] %vm49_vm0, %v147_v23 }
  0xe7   :  { %160 = dma.vmem_to_hbm [thread:$0]  %s156_s1, 16, %s158_s23, [#allocation5]  }
  0xe8   :  { %252 = dma.done.wait [#allocation5], 16  }
  0xe9   :  { %253 = vsyncadd [#allocation5], 4294967280 }
  0xea   :  { %165 = vsyncpa [#allocation4], 1 }
  0xeb   :  { %166 = vsyncpa [#allocation7], 1 }
  0xec   :  { %167 = vsyncpa [#allocation5], 1 }

</bundles_post_ra>
